<compile_context>
chip_gen: v5e
topology: v5e:2x2
jax: 0.10.0
libtpu: 0.0.40
codegen_flags: <defaults>
</compile_context>

<pallas_src>
import math

import jax
import jax.numpy as jnp
from jax.experimental import pallas as pl
from jax.experimental.pallas import tpu as pltpu

IN_FEATURES = 2
HIDDEN = 25
OUT_FEATURES = 2
PAD = 128      # lane-aligned padded hidden width
OUT_PAD = 8    # sublane-aligned padded final width (rows 2..7 stay exactly zero)


def _round_up(n, m):
    return ((n + m - 1) // m) * m


def _cdiv(a, b):
    return (a + b - 1) // b


def mlp_kernel(x_ref, w1_ref, b1_ref, w2_ref, b2_ref, w3_ref, b3_ref,
               w4_ref, b4_ref, o_ref):
    """One grid step: (2, TB) input tile -> (2, TB) output tile (feature-major)."""
    # ---- Layer 1 on the VPU: a K=2 contraction is not worth an MXU pass. ----
    w1 = w1_ref[...]                                       # (PAD, 2) f32
    h = jnp.tanh(w1[:, 0:1] * x_ref[0:1, :]                # (PAD,1) * (1,TB)
                 + w1[:, 1:2] * x_ref[1:2, :]
                 + b1_ref[...])                            # (PAD, TB) f32

    # ---- Layers 2-4 on the MXU: operands in the (pre-cast) weight dtype,
    #      f32 accumulation, f32 bias-add + tanh (VPU/EUP). ----
    def layer(h, w_ref, b_ref):
        acc = jnp.dot(w_ref[...], h.astype(w_ref.dtype),
                      preferred_element_type=jnp.float32)
        return jnp.tanh(acc + b_ref[...])

    h = layer(h, w2_ref, b2_ref)                           # (PAD, TB)
    h = layer(h, w3_ref, b3_ref)                           # (PAD, TB)
    h = layer(h, w4_ref, b4_ref)                           # (OUT_PAD, TB)
    o_ref[...] = h[:OUT_FEATURES, :].astype(o_ref.dtype)   # lane-dense (2, TB) store


def custom_net_forward(x, params, *, block_b=4096, compute_dtype=jnp.bfloat16,
                       vmem_limit_bytes=None):
    """x: (B, 2) float32 -> (B, 2) float32.  params: feature-major padded tensors."""
    B, fin = x.shape
    assert fin == IN_FEATURES

    w1t, b1 = params["w1t"], params["b1"]
    w2t, b2 = params["w2t"], params["b2"]
    w3t, b3 = params["w3t"], params["b3"]
    w4t, b4 = params["w4t"], params["b4"]

    # Pre-cast the MXU weights once in the wrapper (not once per grid step in-kernel).
    if compute_dtype != jnp.float32:
        w2t = w2t.astype(compute_dtype)
        w3t = w3t.astype(compute_dtype)
        w4t = w4t.astype(compute_dtype)

    # Batch tiling: batch is the lane axis, so tiles are multiples of 128 rows.
    # Choose the per-step tile to minimize padding waste while staying <= block_b.
    bp0 = _round_up(B, 128)
    n_steps = max(1, _cdiv(bp0, max(block_b, 128)))
    tb = _round_up(_cdiv(bp0, n_steps), 128)
    Bp = tb * n_steps

    # Feature-major input: (B, 2) -> (2, Bp); each (2, tb) tile is a contiguous,
    # lane-dense DMA (vs. the old 8-byte-per-row strided (tb, 2) transfers).
    xt = jnp.transpose(x)
    if Bp != B:
        xt = jnp.pad(xt, ((0, 0), (0, Bp - B)))

    if vmem_limit_bytes is None:
        # ~4 live (PAD, tb) f32 intermediates + i/o double-buffers + weights + slack,
        # clamped to a range that is safe on v5e/v6e/v7x scoped VMEM.
        est = 4 * PAD * tb * 4 + 4 * IN_FEATURES * tb * 4 + (2 << 20)
        vmem_limit_bytes = max(32 << 20, min(est, 48 << 20))

    def const(a):   # same block every step -> stays resident in VMEM (fetched once)
        return pl.BlockSpec(a.shape, lambda i: (0, 0))

    flops = 2 * Bp * (IN_FEATURES * PAD + 2 * PAD * PAD + PAD * OUT_PAD)
    transcendentals = Bp * (3 * PAD + OUT_PAD)
    bytes_accessed = (4 * IN_FEATURES * Bp + 4 * OUT_FEATURES * Bp
                      + sum(int(a.size) * a.dtype.itemsize
                            for a in (w1t, b1, w2t, b2, w3t, b3, w4t, b4)))

    out_t = pl.pallas_call(
        mlp_kernel,
        out_shape=jax.ShapeDtypeStruct((OUT_FEATURES, Bp), jnp.float32),
        grid=(Bp // tb,),
        in_specs=[
            pl.BlockSpec((IN_FEATURES, tb), lambda i: (0, i)),  # x tile marches over batch
            const(w1t), const(b1), const(w2t), const(b2),
            const(w3t), const(b3), const(w4t), const(b4),
        ],
        out_specs=pl.BlockSpec((OUT_FEATURES, tb), lambda i: (0, i)),  # small + lane-dense
        compiler_params=pltpu.CompilerParams(
            dimension_semantics=("parallel",),   # batch axis; megacore sharding
            vmem_limit_bytes=vmem_limit_bytes),
        cost_estimate=pl.CostEstimate(flops=flops,
                                      transcendentals=transcendentals,
                                      bytes_accessed=bytes_accessed),
    )(xt, w1t, b1, w2t, b2, w3t, b3, w4t, b4)

    return jnp.transpose(out_t[:, :B])   # back to (B, 2)


def init_params(key):
    """Deterministic init matching nn.Linear defaults.

    Returns (kernel_params, raw_params):
      * raw_params   : W_i (in, out) and b_i (1, out), for the pure-JAX reference.
      * kernel_params: feature-major zero-padded tensors for the Pallas kernel:
          w1t (PAD, 2), w2t/w3t (PAD, PAD), w4t (OUT_PAD, PAD), biases (rows, 1).
        Zero padding is exact: padded rows get bias 0 -> tanh(0) = 0, and padded
        columns then multiply those zeros.
    """
    dims = [(IN_FEATURES, HIDDEN), (HIDDEN, HIDDEN),
            (HIDDEN, HIDDEN), (HIDDEN, OUT_FEATURES)]
    kparams, raw = {}, {}
    for i, (fan_in, fan_out) in enumerate(dims, start=1):
        key, kw, kb = jax.random.split(key, 3)
        bound = 1.0 / math.sqrt(float(fan_in))
        # PyTorch stores W as (out, in) with uniform(-1/sqrt(fan_in), 1/sqrt(fan_in)).
        w_torch = jax.random.uniform(kw, (fan_out, fan_in), jnp.float32,
                                     minval=-bound, maxval=bound)
        b_torch = jax.random.uniform(kb, (fan_out,), jnp.float32,
                                     minval=-bound, maxval=bound)
        raw[f"w{i}"] = jnp.transpose(w_torch)          # (in, out), for x @ W
        raw[f"b{i}"] = b_torch.reshape(1, fan_out)

        rows = PAD if i < 4 else OUT_PAD               # padded output-feature dim
        cols = IN_FEATURES if i == 1 else PAD          # padded input-feature dim
        wt = jnp.zeros((rows, cols), jnp.float32).at[:fan_out, :fan_in].set(w_torch)
        bt = jnp.zeros((rows, 1), jnp.float32).at[:fan_out, 0].set(b_torch)
        kparams[f"w{i}t"], kparams[f"b{i}"] = wt, bt
    return kparams, raw


def reference_forward(x, raw_params):
    h = x
    for i in range(1, 5):
        h = jnp.tanh(h @ raw_params[f"w{i}"] + raw_params[f"b{i}"])
    return h


if __name__ == "__main__":
    key = jax.random.PRNGKey(0)
    kx, kp = jax.random.split(key)

    B = 64   # small demo batch; a single (2, 128) lane-padded tile
    x = jax.random.normal(kx, (B, IN_FEATURES), dtype=jnp.float32)
    kparams, raw_params = init_params(kp)
    ref = reference_forward(x, raw_params)

    # Exact f32 path.
    out_f32 = jax.block_until_ready(
        custom_net_forward(x, kparams, compute_dtype=jnp.float32))
    assert out_f32.shape == (B, OUT_FEATURES)
    assert jnp.allclose(out_f32, ref, atol=1e-5, rtol=1e-5), "f32 kernel mismatch vs reference"

    # Default bf16 MXU path (bf16 operands, f32 accumulation / bias / tanh).
    out_bf16 = jax.block_until_ready(custom_net_forward(x, kparams))
    assert out_bf16.shape == (B, OUT_FEATURES)
    assert jnp.allclose(out_bf16, ref, atol=3e-2, rtol=3e-2), "bf16 kernel mismatch vs reference"

    print("KERNEL_OK")
</pallas_src>

<mosaic_0001>
module attributes {stable_mosaic.version = 11 : i64} {
  func.func @mlp_kernel(%arg0: i32, %arg1: memref<2x128xf32, #tpu.memory_space<vmem>>, %arg2: memref<128x2xf32, #tpu.memory_space<vmem>>, %arg3: memref<128x1xf32, #tpu.memory_space<vmem>>, %arg4: memref<128x128xf32, #tpu.memory_space<vmem>>, %arg5: memref<128x1xf32, #tpu.memory_space<vmem>>, %arg6: memref<128x128xf32, #tpu.memory_space<vmem>>, %arg7: memref<128x1xf32, #tpu.memory_space<vmem>>, %arg8: memref<8x128xf32, #tpu.memory_space<vmem>>, %arg9: memref<8x1xf32, #tpu.memory_space<vmem>>, %arg10: memref<2x128xf32, #tpu.memory_space<vmem>>) attributes {dimension_semantics = [#tpu.dimension_semantics<parallel>], iteration_bounds = array<i64: 1>, scalar_prefetch = 0 : i64, scratch_operands = 0 : i64, tpu.core_type = #tpu.core_type<tc>, window_params = [{transform_indices = @transform_0, window_bounds = array<i64: 2, 128>}, {pipeline_mode = #tpu.pipeline_mode<synchronous>, transform_indices = @transform_1, window_bounds = array<i64: 128, 2>}, {pipeline_mode = #tpu.pipeline_mode<synchronous>, transform_indices = @transform_2, window_bounds = array<i64: 128, 1>}, {pipeline_mode = #tpu.pipeline_mode<synchronous>, transform_indices = @transform_3, window_bounds = array<i64: 128, 128>}, {pipeline_mode = #tpu.pipeline_mode<synchronous>, transform_indices = @transform_4, window_bounds = array<i64: 128, 1>}, {pipeline_mode = #tpu.pipeline_mode<synchronous>, transform_indices = @transform_5, window_bounds = array<i64: 128, 128>}, {pipeline_mode = #tpu.pipeline_mode<synchronous>, transform_indices = @transform_6, window_bounds = array<i64: 128, 1>}, {pipeline_mode = #tpu.pipeline_mode<synchronous>, transform_indices = @transform_7, window_bounds = array<i64: 8, 128>}, {pipeline_mode = #tpu.pipeline_mode<synchronous>, transform_indices = @transform_8, window_bounds = array<i64: 8, 1>}, {transform_indices = @transform_9, window_bounds = array<i64: 2, 128>}]} {
    %c0 = arith.constant 0 : index
    %c0_0 = arith.constant 0 : index
    %0 = vector.load %arg2[%c0, %c0_0] : memref<128x2xf32, #tpu.memory_space<vmem>>, vector<128x2xf32>
    %1 = vector.extract_strided_slice %0 {offsets = [0, 0], sizes = [128, 1], strides = [1, 1]} : vector<128x2xf32> to vector<128x1xf32>
    %c0_1 = arith.constant 0 : index
    %c0_2 = arith.constant 0 : index
    %2 = vector.load %arg1[%c0_1, %c0_2] : memref<2x128xf32, #tpu.memory_space<vmem>>, vector<1x128xf32>
    %3 = vector.broadcast %1 : vector<128x1xf32> to vector<128x128xf32>
    %4 = vector.broadcast %2 : vector<1x128xf32> to vector<128x128xf32>
    %5 = arith.mulf %3, %4 : vector<128x128xf32>
    %6 = vector.extract_strided_slice %0 {offsets = [0, 1], sizes = [128, 1], strides = [1, 1]} : vector<128x2xf32> to vector<128x1xf32>
    %c1 = arith.constant 1 : index
    %c0_3 = arith.constant 0 : index
    %7 = vector.load %arg1[%c1, %c0_3] : memref<2x128xf32, #tpu.memory_space<vmem>>, vector<1x128xf32>
    %8 = vector.broadcast %6 : vector<128x1xf32> to vector<128x128xf32>
    %9 = vector.broadcast %7 : vector<1x128xf32> to vector<128x128xf32>
    %10 = arith.mulf %8, %9 : vector<128x128xf32>
    %11 = arith.addf %5, %10 : vector<128x128xf32>
    %c0_4 = arith.constant 0 : index
    %c0_5 = arith.constant 0 : index
    %12 = vector.load %arg3[%c0_4, %c0_5] : memref<128x1xf32, #tpu.memory_space<vmem>>, vector<128x1xf32>
    %13 = vector.broadcast %12 : vector<128x1xf32> to vector<128x128xf32>
    %14 = arith.addf %11, %13 : vector<128x128xf32>
    %15 = math.tanh %14 : vector<128x128xf32>
    %c0_6 = arith.constant 0 : index
    %c0_7 = arith.constant 0 : index
    %16 = vector.load %arg4[%c0_6, %c0_7] : memref<128x128xf32, #tpu.memory_space<vmem>>, vector<128x128xf32>
    %cst = arith.constant dense<0.000000e+00> : vector<128x128xf32>
    %17 = tpu.matmul %16, %15, %cst {dimension_numbers = #tpu.dot_dimension_numbers<[1], [0], [0], [1], [0, 0, 1, 1], [], []>} : vector<128x128xf32>, vector<128x128xf32>, vector<128x128xf32> -> vector<128x128xf32>
    %c0_8 = arith.constant 0 : index
    %c0_9 = arith.constant 0 : index
    %18 = vector.load %arg5[%c0_8, %c0_9] : memref<128x1xf32, #tpu.memory_space<vmem>>, vector<128x1xf32>
    %19 = vector.broadcast %18 : vector<128x1xf32> to vector<128x128xf32>
    %20 = arith.addf %17, %19 : vector<128x128xf32>
    %21 = math.tanh %20 : vector<128x128xf32>
    %c0_10 = arith.constant 0 : index
    %c0_11 = arith.constant 0 : index
    %22 = vector.load %arg6[%c0_10, %c0_11] : memref<128x128xf32, #tpu.memory_space<vmem>>, vector<128x128xf32>
    %cst_12 = arith.constant dense<0.000000e+00> : vector<128x128xf32>
    %23 = tpu.matmul %22, %21, %cst_12 {dimension_numbers = #tpu.dot_dimension_numbers<[1], [0], [0], [1], [0, 0, 1, 1], [], []>} : vector<128x128xf32>, vector<128x128xf32>, vector<128x128xf32> -> vector<128x128xf32>
    %c0_13 = arith.constant 0 : index
    %c0_14 = arith.constant 0 : index
    %24 = vector.load %arg7[%c0_13, %c0_14] : memref<128x1xf32, #tpu.memory_space<vmem>>, vector<128x1xf32>
    %25 = vector.broadcast %24 : vector<128x1xf32> to vector<128x128xf32>
    %26 = arith.addf %23, %25 : vector<128x128xf32>
    %27 = math.tanh %26 : vector<128x128xf32>
    %c0_15 = arith.constant 0 : index
    %c0_16 = arith.constant 0 : index
    %28 = vector.load %arg8[%c0_15, %c0_16] : memref<8x128xf32, #tpu.memory_space<vmem>>, vector<8x128xf32>
    %cst_17 = arith.constant dense<0.000000e+00> : vector<8x128xf32>
    %29 = tpu.matmul %28, %27, %cst_17 {dimension_numbers = #tpu.dot_dimension_numbers<[1], [0], [0], [1], [0, 0, 1, 1], [], []>} : vector<8x128xf32>, vector<128x128xf32>, vector<8x128xf32> -> vector<8x128xf32>
    %c0_18 = arith.constant 0 : index
    %c0_19 = arith.constant 0 : index
    %30 = vector.load %arg9[%c0_18, %c0_19] : memref<8x1xf32, #tpu.memory_space<vmem>>, vector<8x1xf32>
    %31 = vector.broadcast %30 : vector<8x1xf32> to vector<8x128xf32>
    %32 = arith.addf %29, %31 : vector<8x128xf32>
    %33 = math.tanh %32 : vector<8x128xf32>
    %34 = vector.extract_strided_slice %33 {offsets = [0, 0], sizes = [2, 128], strides = [1, 1]} : vector<8x128xf32> to vector<2x128xf32>
    %c0_20 = arith.constant 0 : index
    %c0_21 = arith.constant 0 : index
    %35 = vector.load %arg10[%c0_20, %c0_21] : memref<2x128xf32, #tpu.memory_space<vmem>>, vector<2x128xf32>
    tpu.vector_store %arg10[%c0_20, %c0_21], %34 {strides = array<i32>} : memref<2x128xf32, #tpu.memory_space<vmem>>, vector<2x128xf32>,
    return
  }
  func.func @transform_0(%arg0: i32) -> (i32, i32) {
    %c0_i32 = arith.constant 0 : i32
    %c0_i32_0 = arith.constant 0 : i32
    return %c0_i32, %arg0 : i32, i32
  }
  func.func @transform_1(%arg0: i32) -> (i32, i32) {
    %c0_i32 = arith.constant 0 : i32
    %c0_i32_0 = arith.constant 0 : i32
    %c0_i32_1 = arith.constant 0 : i32
    return %c0_i32, %c0_i32_0 : i32, i32
  }
  func.func @transform_2(%arg0: i32) -> (i32, i32) {
    %c0_i32 = arith.constant 0 : i32
    %c0_i32_0 = arith.constant 0 : i32
    %c0_i32_1 = arith.constant 0 : i32
    return %c0_i32, %c0_i32_0 : i32, i32
  }
  func.func @transform_3(%arg0: i32) -> (i32, i32) {
    %c0_i32 = arith.constant 0 : i32
    %c0_i32_0 = arith.constant 0 : i32
    %c0_i32_1 = arith.constant 0 : i32
    return %c0_i32, %c0_i32_0 : i32, i32
  }
  func.func @transform_4(%arg0: i32) -> (i32, i32) {
    %c0_i32 = arith.constant 0 : i32
    %c0_i32_0 = arith.constant 0 : i32
    %c0_i32_1 = arith.constant 0 : i32
    return %c0_i32, %c0_i32_0 : i32, i32
  }
  func.func @transform_5(%arg0: i32) -> (i32, i32) {
    %c0_i32 = arith.constant 0 : i32
    %c0_i32_0 = arith.constant 0 : i32
    %c0_i32_1 = arith.constant 0 : i32
    return %c0_i32, %c0_i32_0 : i32, i32
  }
  func.func @transform_6(%arg0: i32) -> (i32, i32) {
    %c0_i32 = arith.constant 0 : i32
    %c0_i32_0 = arith.constant 0 : i32
    %c0_i32_1 = arith.constant 0 : i32
    return %c0_i32, %c0_i32_0 : i32, i32
  }
  func.func @transform_7(%arg0: i32) -> (i32, i32) {
    %c0_i32 = arith.constant 0 : i32
    %c0_i32_0 = arith.constant 0 : i32
    %c0_i32_1 = arith.constant 0 : i32
    return %c0_i32, %c0_i32_0 : i32, i32
  }
  func.func @transform_8(%arg0: i32) -> (i32, i32) {
    %c0_i32 = arith.constant 0 : i32
    %c0_i32_0 = arith.constant 0 : i32
    %c0_i32_1 = arith.constant 0 : i32
    return %c0_i32, %c0_i32_0 : i32, i32
  }
  func.func @transform_9(%arg0: i32) -> (i32, i32) {
    %c0_i32 = arith.constant 0 : i32
    %c0_i32_0 = arith.constant 0 : i32
    return %c0_i32, %arg0 : i32, i32
  }
}

</mosaic_0001>

<bundles_post_ra>
// kernel: tpu_custom_call.1
= control target key start
LH: loop header
LB: loop body
LE: loop exit
PB: predicated region body
PF: predicated region fallthrough
CT: control target
= control target key end

     0   :  { %v974_v3 = vmov 0   ;;  %s1423_s0 = inlined_call_operand.vmem [shape: f32[2,128], index: 0, kind: input, shape index: {}]   ;;  %s1424_s1 = inlined_call_operand.vmem [shape: f32[128,2], index: 1, kind: input, shape index: {}]   ;;  %s1425_s2 = inlined_call_operand.vmem [shape: f32[128,1], index: 2, kind: input, shape index: {}]   ;;  %s1426_s3 = inlined_call_operand.vmem [shape: f32[128,128], index: 3, kind: input, shape index: {}]   ;;  %s1427_s4 = inlined_call_operand.vmem [shape: f32[128,1], index: 4, kind: input, shape index: {}]   ;;  %s1428_s5 = inlined_call_operand.vmem [shape: f32[128,128], index: 5, kind: input, shape index: {}]   ;;  %s1429_s6 = inlined_call_operand.vmem [shape: f32[128,1], index: 6, kind: input, shape index: {}]   ;;  %s1430_s7 = inlined_call_operand.vmem [shape: f32[8,128], index: 7, kind: input, shape index: {}]   ;;  %s1431_s8 = inlined_call_operand.vmem [shape: f32[8,1], index: 8, kind: input, shape index: {}]   ;;  %s1432_s9 = inlined_call_operand.hbm [shape: f32[2,128], index: 9, kind: output, shape index: {}]  }
   0x1   :  { %v48_v0 = vld [vmem:[%s1424_s1 + $0x78] sm:$0xff]  ;;  %v47_v1 = vld [vmem:[%s1424_s1 + $0x70] sm:$0xff]  ;;  %v46_v2 = vld [vmem:[%s1424_s1 + $0x68] sm:$0xff]  ;;  %843 = vset.pattern.permute.xlu2 %v974_v3  ;;  %841 = vset.pattern.permute.xlu1 %v974_v3 }
   0x2   :  { %839 = vset.pattern.permute.xlu0 %v974_v3  ;;  %122 = vperm.xlu1 %841, %v47_v1  }
   0x3   :  { %127 = vperm.xlu0 %839, %v48_v0   ;;  %117 = vperm.xlu2 %843, %v46_v2  }
   0x4   :  { %14 = vsyncpa [#allocation3], 0  ;;  %v975_v4 = vmov 1   ;;  %v45_v5 = vld [vmem:[%s1424_s1 + $0x60] sm:$0xff]  ;;  %v260_v6 = vld [vmem:[%s1425_s2 + $0x78] sm:$0xff]  ;;  %s976_s12 = smov [#allocation2]  }
   0x5   :  { %v44_v7 = vld [vmem:[%s1424_s1 + $0x58] sm:$0xff]  ;;  %v259_v8 = vld [vmem:[%s1425_s2 + $0x70] sm:$0xff]  ;;  %v258_v10 = vld [vmem:[%s1425_s2 + $0x68] sm:$0xff]  ;;  %s795_s15 = sshll.u32 %s1432_s9, 4  ;;  %s796_s15 = int_to_ptr.hbm [resolvable:$true] %s795_s15 }
   0x6   :  { %v43_v9 = vld [vmem:[%s1424_s1 + $0x50] sm:$0xff]  ;;  %v42_v11 = vld [vmem:[%s1424_s1 + $0x48] sm:$0xff]  ;;  %v257_v12 = vld [vmem:[%s1425_s2 + $0x60] sm:$0xff] }
   0x7   :  { %v41_v13 = vld [vmem:[%s1424_s1 + $0x40] sm:$0xff]  ;;  %v256_v14 = vld [vmem:[%s1425_s2 + $0x58] sm:$0xff]  ;;  %v255_v16 = vld [vmem:[%s1425_s2 + $0x50] sm:$0xff] }
   0x8   :  { %v40_v15 = vld [vmem:[%s1424_s1 + $0x38] sm:$0xff]  ;;  %v39_v17 = vld [vmem:[%s1424_s1 + $0x30] sm:$0xff]  ;;  %v254_v18 = vld [vmem:[%s1425_s2 + $0x48] sm:$0xff] }
   0x9   :  { %v38_v19 = vld [vmem:[%s1424_s1 + $0x28] sm:$0xff]  ;;  %v253_v20 = vld [vmem:[%s1425_s2 + $0x40] sm:$0xff]  ;;  %v252_v22 = vld [vmem:[%s1425_s2 + $0x38] sm:$0xff] }
   0xa   :  { %842 = vset.pattern.permute.xlu1 %v975_v4  ;;  %v37_v21 = vld [vmem:[%s1424_s1 + $0x20] sm:$0xff]  ;;  %v36_v23 = vld [vmem:[%s1424_s1 + $0x18] sm:$0xff]  ;;  %v251_v24 = vld [vmem:[%s1425_s2 + $0x30] sm:$0xff] }
   0xb   :  { %840 = vset.pattern.permute.xlu0 %v975_v4  ;;  %844 = vset.pattern.permute.xlu2 %v975_v4  ;;  %v35_v26 = vld [vmem:[%s1424_s1 + $0x10] sm:$0xff]  ;;  %v250_v27 = vld [vmem:[%s1425_s2 + $0x28] sm:$0xff]  ;;  %v249_v30 = vld [vmem:[%s1425_s2 + $0x20] sm:$0xff] }
   0xc   :  { %209 = vperm.xlu0 %840, %v48_v0   ;;  %205 = vperm.xlu1 %842, %v47_v1   ;;  %v34_v29 = vld [vmem:[%s1424_s1 + $0x8] sm:$0xff]  ;;  %v33_v32 = vld [vmem:[%s1424_s1] sm:$0xff]  ;;  %v248_v33 = vld [vmem:[%s1425_s2 + $0x18] sm:$0xff] }
   0xd   :  { %201 = vperm.xlu2 %844, %v46_v2   ;;  %v247_v37 = vld [vmem:[%s1425_s2 + $0x10] sm:$0xff]  ;;  %v245_v38 = vld [vmem:[%s1425_s2] sm:$0xff]  ;;  %v246_v39 = vld [vmem:[%s1425_s2 + $0x8] sm:$0xff]  ;;  %s793_s2 = sshll.u32 %s976_s12, 4  ;;  %s794_s2 = int_to_ptr.vmem [resolvable:$true] %s793_s2 }
   0xe   :  { %v1138_v42 = vld [vmem:[%s1423_s0 + $0x1] ss:$0 sm:$0xff]  ;;  %v1145_v44 = vld [vmem:[%s1423_s0] ss:$0 sm:$0xff]  ;;  %v404_v46 = vld [vmem:[%s1427_s4 + $0x78] sm:$0xff] }
   0xf   :  { %v400_v47 = vld [vmem:[%s1427_s4 + $0x58] sm:$0xff]  ;;  %v403_v48 = vld [vmem:[%s1427_s4 + $0x70] sm:$0xff]  ;;  %v402_v56 = vld [vmem:[%s1427_s4 + $0x68] sm:$0xff] }
  0x10   :  { %v397_v57 = vld [vmem:[%s1427_s4 + $0x40] sm:$0xff]  ;;  %v394_v4 = vld [vmem:[%s1427_s4 + $0x28] sm:$0xff] }
  0x11   :  { %v401_v58 = vld [vmem:[%s1427_s4 + $0x60] sm:$0xff] }
  0x14   :  { %845 = vset.pattern.permute.xlu1 %v974_v3  ;;  %197 = vperm.xlu0 %840, %v45_v5  }
  0x15   :  { %846 = vset.pattern.permute.xlu2 %v974_v3  ;;  %338 = vperm.xlu1 %845, %v260_v6  }
  0x16   :  { %112 = vperm.xlu2 %846, %v45_v5   ;;  %v398_v5 = vld [vmem:[%s1427_s4 + $0x48] sm:$0xff] }
  0x1c   :  { %193 = vperm.xlu0 %840, %v44_v7  }
  0x1d   :  { %333 = vperm.xlu1 %845, %v259_v8  }
  0x1e   :  { %107 = vperm.xlu2 %846, %v44_v7  }
  0x24   :  { %189 = vperm.xlu0 %840, %v43_v9  }
  0x25   :  { %328 = vperm.xlu1 %845, %v258_v10  }
  0x26   :  { %102 = vperm.xlu2 %846, %v43_v9  }
  0x2c   :  { %185 = vperm.xlu0 %840, %v42_v11  }
  0x2d   :  { %323 = vperm.xlu1 %845, %v257_v12  }
  0x2e   :  { %97 = vperm.xlu2 %846, %v42_v11  }
  0x34   :  { %181 = vperm.xlu0 %840, %v41_v13  }
  0x35   :  { %318 = vperm.xlu1 %845, %v256_v14   ;;  %v396_v14 = vld [vmem:[%s1427_s4 + $0x38] sm:$0xff] }
  0x36   :  { %92 = vperm.xlu2 %846, %v41_v13  }
  0x3c   :  { %177 = vperm.xlu0 %840, %v40_v15  }
  0x3d   :  { %313 = vperm.xlu1 %845, %v255_v16   ;;  %v395_v16 = vld [vmem:[%s1427_s4 + $0x30] sm:$0xff] }
  0x3e   :  { %87 = vperm.xlu2 %846, %v40_v15   ;;  %v391_v15 = vld [vmem:[%s1427_s4 + $0x10] sm:$0xff] }
  0x44   :  { %173 = vperm.xlu0 %840, %v39_v17  }
  0x45   :  { %308 = vperm.xlu1 %845, %v254_v18  }
  0x46   :  { %82 = vperm.xlu2 %846, %v39_v17  }
  0x4c   :  { %169 = vperm.xlu0 %840, %v38_v19  }
  0x4d   :  { %303 = vperm.xlu1 %845, %v253_v20  }
  0x4e   :  { %77 = vperm.xlu2 %846, %v38_v19  }
  0x54   :  { %165 = vperm.xlu0 %840, %v37_v21  }
  0x55   :  { %298 = vperm.xlu1 %845, %v252_v22  }
  0x56   :  { %72 = vperm.xlu2 %846, %v37_v21  }
  0x5c   :  { %161 = vperm.xlu0 %840, %v36_v23  }
  0x5d   :  { %293 = vperm.xlu1 %845, %v251_v24   ;;  %v1101_v25 = vpop.permute.xlu2 %117  ;;  %v393_v24 = vld [vmem:[%s1427_s4 + $0x20] sm:$0xff] }
  0x5e   :  { %67 = vperm.xlu2 %846, %v36_v23   ;;  %v144_v1 = vmul.f32 %v1145_v44, %v1101_v25  ;;  %v597_v25 = vld [vmem:[%s1429_s6 + $0x78] sm:$0xff] }
  0x64   :  { %157 = vperm.xlu0 %840, %v35_v26  }
  0x65   :  { %288 = vperm.xlu1 %845, %v250_v27  }
  0x66   :  { %62 = vperm.xlu2 %846, %v35_v26   ;;  %v392_v26 = vld [vmem:[%s1427_s4 + $0x18] sm:$0xff] }
  0x67   :  { %v202_v28 = vpop.permute.xlu2 %201 }
  0x68   :  { %v226_v2 = vmul.f32 %v1138_v42, %v202_v28 }
  0x6a   :  { %v242_v8 = vadd.f32 %v226_v2, %v144_v1 }
  0x6c   :  { %153 = vperm.xlu0 %840, %v34_v29  }
  0x6d   :  { %283 = vperm.xlu1 %845, %v249_v30  }
  0x6e   :  { %57 = vperm.xlu2 %846, %v34_v29  }
  0x70   :  { %v1115_v31 = vpop.permute.xlu2 %112 }
  0x71   :  { %v143_v12 = vmul.f32 %v1145_v44, %v1115_v31 }
  0x74   :  { %149 = vperm.xlu0 %840, %v33_v32   ;;  %v123_v34 = vpop.permute.xlu1 %122 }
  0x75   :  { %278 = vperm.xlu1 %845, %v248_v33   ;;  %v128_v35 = vpop.permute.xlu0 %127  ;;  %v145_v59 = vmul.f32 %v1145_v44, %v123_v34 }
  0x76   :  { %52 = vperm.xlu2 %846, %v33_v32   ;;  %v146_v49 = vmul.f32 %v1145_v44, %v128_v35  ;;  %v390_v35 = vld [vmem:[%s1427_s4 + $0x8] sm:$0xff] }
  0x78   :  { %v1123_v36 = vpop.permute.xlu2 %107 }
  0x79   :  { %v142_v27 = vmul.f32 %v1145_v44, %v1123_v36  ;;  %v594_v36 = vld [vmem:[%s1429_s6 + $0x60] sm:$0xff] }
  0x7c   :  { %847 = vset.pattern.permute.xlu0 %v974_v3  ;;  %v399_v3 = vld [vmem:[%s1427_s4 + $0x50] sm:$0xff] }
  0x7d   :  { %273 = vperm.xlu1 %845, %v247_v37   ;;  %263 = vperm.xlu0 %847, %v245_v38   ;;  %v389_v37 = vld [vmem:[%s1427_s4] sm:$0xff] }
  0x7e   :  { %268 = vperm.xlu2 %846, %v246_v39   ;;  %v210_v40 = vpop.permute.xlu0 %209  ;;  %v206_v41 = vpop.permute.xlu1 %205 }
  0x7f   :  { %v228_v45 = vmul.f32 %v1138_v42, %v210_v40  ;;  %v227_v54 = vmul.f32 %v1138_v42, %v206_v41 }
  0x80   :  { %v1140_v43 = vpop.permute.xlu2 %102 }
  0x81   :  { %v244_v51 = vadd.f32 %v228_v45, %v146_v49  ;;  %v243_v61 = vadd.f32 %v227_v54, %v145_v59  ;;  %v141_v38 = vmul.f32 %v1145_v44, %v1140_v43  ;;  %v596_v49 = vld [vmem:[%s1429_s6 + $0x70] sm:$0xff]  ;;  %v591_v43 = vld [vmem:[%s1429_s6 + $0x48] sm:$0xff]  ;;  %v593_v59 = vld [vmem:[%s1429_s6 + $0x58] sm:$0xff] }
  0x85   :  { %482 = vperm.xlu1 %845, %v404_v46   ;;  %462 = vperm.xlu0 %847, %v400_v47  }
  0x86   :  { %477 = vperm.xlu2 %846, %v403_v48   ;;  %v198_v50 = vpop.permute.xlu0 %197 }
  0x87   :  { %v339_v52 = vpop.permute.xlu1 %338  ;;  %v225_v13 = vmul.f32 %v1138_v42, %v198_v50  ;;  %v595_v50 = vld [vmem:[%s1429_s6 + $0x68] sm:$0xff] }
  0x88   :  { %v356_v53 = vadd.f32 %v339_v52, %v244_v51  ;;  %v1159_v55 = vpop.permute.xlu2 %97 }
  0x89   :  { %v241_v19 = vadd.f32 %v225_v13, %v143_v12  ;;  %v140_v51 = vmul.f32 %v1145_v44, %v1159_v55  ;;  %v588_v55 = vld [vmem:[%s1429_s6 + $0x30] sm:$0xff] }
  0x8a   :  { %850 = vtanh.f32 %v356_v53 }
  0x8d   :  { %472 = vperm.xlu1 %845, %v402_v56   ;;  %447 = vperm.xlu0 %847, %v397_v57  }
  0x8e   :  { %467 = vperm.xlu2 %846, %v401_v58   ;;  %v194_v60 = vpop.permute.xlu0 %193 }
  0x8f   :  { %v334_v62 = vpop.permute.xlu1 %333  ;;  %v224_v23 = vmul.f32 %v1138_v42, %v194_v60  ;;  %v592_v60 = vld [vmem:[%s1429_s6 + $0x50] sm:$0xff] }
  0x90   :  { %v851_v63 = vpop.eup %850  ;;  %v355_v0 = vadd.f32 %v334_v62, %v243_v61  ;;  %v1183_v6 = vpop.permute.xlu2 %92 }
  0x91   :  { %485 = vmatpush.msra.mxu0 %v851_v63  ;;  %804 = vmatpush.msra.mxu3 %v851_v63  ;;  %v240_v29 = vadd.f32 %v224_v23, %v142_v27  ;;  %v139_v61 = vmul.f32 %v1145_v44, %v1183_v6  ;;  %v585_v6 = vld [vmem:[%s1429_s6 + $0x18] sm:$0xff]  ;;  %v584_v27 = vld [vmem:[%s1429_s6 + $0x10] sm:$0xff] }
  0x92   :  { %852 = vtanh.f32 %v355_v0 }
  0x95   :  { %457 = vperm.xlu1 %845, %v399_v3   ;;  %432 = vperm.xlu0 %847, %v394_v4  }
  0x96   :  { %452 = vperm.xlu2 %846, %v398_v5   ;;  %v190_v7 = vpop.permute.xlu0 %189  ;;  %v590_v5 = vld [vmem:[%s1429_s6 + $0x40] sm:$0xff] }
  0x97   :  { %v329_v9 = vpop.permute.xlu1 %328  ;;  %v223_v34 = vmul.f32 %v1138_v42, %v190_v7  ;;  %v589_v7 = vld [vmem:[%s1429_s6 + $0x38] sm:$0xff] }
  0x98   :  { %v853_v10 = vpop.eup %852  ;;  %v354_v11 = vadd.f32 %v329_v9, %v242_v8  ;;  %v1197_v17 = vpop.permute.xlu2 %87 }
  0x99   :  { %486 = vmatpush.msra.mxu0 %v853_v10  ;;  %805 = vmatpush.msra.mxu3 %v853_v10  ;;  %v239_v40 = vadd.f32 %v223_v34, %v141_v38  ;;  %v138_v8 = vmul.f32 %v1145_v44, %v1197_v17  ;;  %v582_v17 = vld [vmem:[%s1429_s6] sm:$0xff] }
  0x9a   :  { %854 = vtanh.f32 %v354_v11 }
  0x9d   :  { %442 = vperm.xlu1 %845, %v396_v14   ;;  %417 = vperm.xlu0 %847, %v391_v15  }
  0x9e   :  { %437 = vperm.xlu2 %846, %v395_v16   ;;  %v186_v18 = vpop.permute.xlu0 %185  ;;  %v587_v16 = vld [vmem:[%s1429_s6 + $0x28] sm:$0xff] }
  0x9f   :  { %v324_v20 = vpop.permute.xlu1 %323  ;;  %v222_v47 = vmul.f32 %v1138_v42, %v186_v18  ;;  %v586_v18 = vld [vmem:[%s1429_s6 + $0x20] sm:$0xff] }
  0xa0   :  { %v855_v21 = vpop.eup %854  ;;  %v353_v22 = vadd.f32 %v324_v20, %v241_v19  ;;  %v1211_v32 = vpop.permute.xlu2 %82 }
  0xa1   :  { %487 = vmatpush.msra.mxu0 %v855_v21  ;;  %806 = vmatpush.msra.mxu3 %v855_v21  ;;  %v238_v53 = vadd.f32 %v222_v47, %v140_v51  ;;  %v137_v19 = vmul.f32 %v1145_v44, %v1211_v32 }
  0xa2   :  { %856 = vtanh.f32 %v353_v22 }
  0xa5   :  { %427 = vperm.xlu1 %845, %v393_v24   ;;  %675 = vperm.xlu0 %847, %v597_v25  }
  0xa6   :  { %422 = vperm.xlu2 %846, %v392_v26   ;;  %v182_v28 = vpop.permute.xlu0 %181 }
  0xa7   :  { %v319_v30 = vpop.permute.xlu1 %318  ;;  %v221_v58 = vmul.f32 %v1138_v42, %v182_v28  ;;  %v583_v28 = vld [vmem:[%s1429_s6 + $0x8] sm:$0xff] }
  0xa8   :  { %v857_v31 = vpop.eup %856  ;;  %v352_v33 = vadd.f32 %v319_v30, %v240_v29  ;;  %v1226_v48 = vpop.permute.xlu2 %77 }
  0xa9   :  { %488 = vmatpush.msra.mxu0 %v857_v31  ;;  %807 = vmatpush.msra.mxu3 %v857_v31  ;;  %v237_v0 = vadd.f32 %v221_v58, %v139_v61  ;;  %v136_v29 = vmul.f32 %v1145_v44, %v1226_v48 }
  0xaa   :  { %858 = vtanh.f32 %v352_v33 }
  0xad   :  { %412 = vperm.xlu1 %845, %v390_v35   ;;  %660 = vperm.xlu0 %847, %v594_v36  }
  0xae   :  { %407 = vperm.xlu2 %846, %v389_v37   ;;  %v178_v39 = vpop.permute.xlu0 %177  ;;  %v760_v37 = vld [vmem:[%s1431_s8] sm:$0xff] }
  0xaf   :  { %v314_v41 = vpop.permute.xlu1 %313  ;;  %v220_v4 = vmul.f32 %v1138_v42, %v178_v39 }
  0xb0   :  { %v859_v45 = vpop.eup %858  ;;  %v351_v46 = vadd.f32 %v314_v41, %v239_v40  ;;  %v1251_v62 = vpop.permute.xlu2 %72 }
  0xb1   :  { %489 = vmatpush.msra.mxu0 %v859_v45  ;;  %808 = vmatpush.msra.mxu3 %v859_v45  ;;  %v236_v11 = vadd.f32 %v220_v4, %v138_v8  ;;  %v135_v38 = vmul.f32 %v1145_v44, %v1251_v62 }
  0xb2   :  { %860 = vtanh.f32 %v351_v46 }
  0xb5   :  { %670 = vperm.xlu1 %845, %v596_v49   ;;  %645 = vperm.xlu0 %847, %v591_v43  }
  0xb6   :  { %665 = vperm.xlu2 %846, %v595_v50   ;;  %v174_v52 = vpop.permute.xlu0 %173 }
  0xb7   :  { %v309_v54 = vpop.permute.xlu1 %308  ;;  %v219_v15 = vmul.f32 %v1138_v42, %v174_v52 }
  0xb8   :  { %v861_v56 = vpop.eup %860  ;;  %v350_v57 = vadd.f32 %v309_v54, %v238_v53  ;;  %v68_v9 = vpop.permute.xlu2 %67 }
  0xb9   :  { %490 = vmatpush.msra.mxu0 %v861_v56  ;;  %809 = vmatpush.msra.mxu3 %v861_v56  ;;  %v235_v21 = vadd.f32 %v219_v15, %v137_v19  ;;  %v134_v48 = vmul.f32 %v1145_v44, %v68_v9  ;;  %v374_v9 = vld [vmem:[%s1426_s3 + $0x8] sm:$0xff]  ;;  %v377_v15 = vld [vmem:[%s1426_s3 + $0x20] sm:$0xff]  ;;  %v379_v19 = vld [vmem:[%s1426_s3 + $0x30] sm:$0xff] }
  0xba   :  { %862 = vtanh.f32 %v350_v57 }
  0xbd   :  { %655 = vperm.xlu1 %845, %v593_v59   ;;  %630 = vperm.xlu0 %847, %v588_v55  }
  0xbe   :  { %650 = vperm.xlu2 %846, %v592_v60   ;;  %v170_v63 = vpop.permute.xlu0 %169 }
  0xbf   :  { %v304_v1 = vpop.permute.xlu1 %303  ;;  %v218_v26 = vmul.f32 %v1138_v42, %v170_v63 }
  0xc0   :  { %v863_v2 = vpop.eup %862  ;;  %v349_v3 = vadd.f32 %v304_v1, %v237_v0  ;;  %v63_v24 = vpop.permute.xlu2 %62 }
  0xc1   :  { %491 = vmatpush.msra.mxu0 %v863_v2  ;;  %810 = vmatpush.msra.mxu3 %v863_v2  ;;  %v234_v31 = vadd.f32 %v218_v26, %v136_v29  ;;  %v133_v58 = vmul.f32 %v1145_v44, %v63_v24 }
  0xc2   :  { %864 = vtanh.f32 %v349_v3 }
  0xc5   :  { %640 = vperm.xlu1 %845, %v590_v5   ;;  %615 = vperm.xlu0 %847, %v585_v6  }
  0xc6   :  { %635 = vperm.xlu2 %846, %v589_v7   ;;  %v166_v10 = vpop.permute.xlu0 %165  ;;  %v382_v7 = vld [vmem:[%s1426_s3 + $0x48] sm:$0xff] }
  0xc7   :  { %v299_v12 = vpop.permute.xlu1 %298  ;;  %v217_v35 = vmul.f32 %v1138_v42, %v166_v10  ;;  %v383_v10 = vld [vmem:[%s1426_s3 + $0x50] sm:$0xff] }
  0xc8   :  { %v865_v13 = vpop.eup %864  ;;  %v348_v14 = vadd.f32 %v299_v12, %v236_v11  ;;  %v58_v36 = vpop.permute.xlu2 %57  ;;  %v375_v11 = vld [vmem:[%s1426_s3 + $0x10] sm:$0xff]  ;;  %v384_v12 = vld [vmem:[%s1426_s3 + $0x58] sm:$0xff] }
  0xc9   :  { %492 = vmatpush.msra.mxu0 %v865_v13  ;;  %811 = vmatpush.msra.mxu3 %v865_v13  ;;  %v233_v40 = vadd.f32 %v217_v35, %v135_v38  ;;  %v132_v56 = vmul.f32 %v1145_v44, %v58_v36  ;;  %v376_v13 = vld [vmem:[%s1426_s3 + $0x18] sm:$0xff] }
  0xca   :  { %866 = vtanh.f32 %v348_v14  ;;  %v385_v14 = vld [vmem:[%s1426_s3 + $0x60] sm:$0xff] }
  0xcd   :  { %625 = vperm.xlu1 %845, %v587_v16   ;;  %600 = vperm.xlu0 %847, %v582_v17   ;;  %v386_v16 = vld [vmem:[%s1426_s3 + $0x68] sm:$0xff] }
  0xce   :  { %620 = vperm.xlu2 %846, %v586_v18   ;;  %v162_v20 = vpop.permute.xlu0 %161  ;;  %v378_v17 = vld [vmem:[%s1426_s3 + $0x28] sm:$0xff]  ;;  %v387_v18 = vld [vmem:[%s1426_s3 + $0x70] sm:$0xff] }
  0xcf   :  { %v294_v22 = vpop.permute.xlu1 %293  ;;  %v216_v47 = vmul.f32 %v1138_v42, %v162_v20  ;;  %v388_v20 = vld [vmem:[%s1426_s3 + $0x78] sm:$0xff] }
  0xd0   :  { %v867_v23 = vpop.eup %866  ;;  %v347_v25 = vadd.f32 %v294_v22, %v235_v21  ;;  %v53_v49 = vpop.permute.xlu2 %52  ;;  %v380_v21 = vld [vmem:[%s1426_s3 + $0x38] sm:$0xff]  ;;  %v381_v22 = vld [vmem:[%s1426_s3 + $0x40] sm:$0xff] }
  0xd1   :  { %493 = vmatpush.msra.mxu0 %v867_v23  ;;  %812 = vmatpush.msra.mxu3 %v867_v23  ;;  %v232_v50 = vadd.f32 %v216_v47, %v134_v48  ;;  %v131_v60 = vmul.f32 %v1145_v44, %v53_v49  ;;  %v373_v44 = vld [vmem:[%s1426_s3] sm:$0xff] }
  0xd2   :  { %868 = vtanh.f32 %v347_v25 }
  0xd5   :  { %610 = vperm.xlu1 %845, %v584_v27  }
  0xd6   :  { %605 = vperm.xlu2 %846, %v583_v28   ;;  %v158_v30 = vpop.permute.xlu0 %157 }
  0xd7   :  { %v289_v32 = vpop.permute.xlu1 %288  ;;  %v215_v57 = vmul.f32 %v1138_v42, %v158_v30 }
  0xd8   :  { %v869_v33 = vpop.eup %868  ;;  %v346_v34 = vadd.f32 %v289_v32, %v234_v31  ;;  %v269_v61 = vpop.permute.xlu2 %268 }
  0xd9   :  { %494 = vmatpush.msra.mxu0 %v869_v33  ;;  %813 = vmatpush.msra.mxu3 %v869_v33  ;;  %v231_v62 = vadd.f32 %v215_v57, %v133_v58 }
  0xda   :  { %870 = vtanh.f32 %v346_v34 }
  0xdd   :  { %763 = vperm.xlu1 %845, %v760_v37  }
  0xde   :  { %v154_v39 = vpop.permute.xlu0 %153 }
  0xdf   :  { %v284_v41 = vpop.permute.xlu1 %283  ;;  %v214_v53 = vmul.f32 %v1138_v42, %v154_v39 }
  0xe0   :  { %v871_v45 = vpop.eup %870  ;;  %v345_v46 = vadd.f32 %v284_v41, %v233_v40  ;;  %v478_v32 = vpop.permute.xlu2 %477 }
  0xe1   :  { %495 = vmatpush.msra.mxu0 %v871_v45  ;;  %814 = vmatpush.msra.mxu3 %v871_v45  ;;  %v230_v59 = vadd.f32 %v214_v53, %v132_v56 }
  0xe2   :  { %872 = vtanh.f32 %v345_v46 }
  0xe3   :  { %v342_v2 = vadd.f32 %v269_v61, %v230_v59 }
  0xe6   :  { %v150_v43 = vpop.permute.xlu0 %149 }
  0xe7   :  { %v279_v51 = vpop.permute.xlu1 %278  ;;  %v213_v55 = vmul.f32 %v1138_v42, %v150_v43 }
  0xe8   :  { %v873_v52 = vpop.eup %872  ;;  %v344_v54 = vadd.f32 %v279_v51, %v232_v50  ;;  %v468_v37 = vpop.permute.xlu2 %467 }
  0xe9   :  { %496 = vmatpush.msra.mxu0 %v873_v52  ;;  %815 = vmatpush.msra.mxu3 %v873_v52  ;;  %v229_v4 = vadd.f32 %v213_v55, %v131_v60 }
  0xea   :  { %874 = vtanh.f32 %v344_v54 }
  0xef   :  { %v274_v63 = vpop.permute.xlu1 %273  ;;  %v264_v0 = vpop.permute.xlu0 %263 }
  0xf0   :  { %v875_v1 = vpop.eup %874  ;;  %v343_v3 = vadd.f32 %v274_v63, %v231_v62  ;;  %v341_v5 = vadd.f32 %v264_v0, %v229_v4  ;;  %v453_v45 = vpop.permute.xlu2 %452 }
  0xf1   :  { %497 = vmatpush.msra.mxu0 %v875_v1  ;;  %816 = vmatpush.msra.mxu3 %v875_v1 }
  0xf2   :  { %876 = vtanh.f32 %v343_v3 }
  0xf3   :  { %878 = vtanh.f32 %v342_v2 }
  0xf4   :  { %880 = vtanh.f32 %v341_v5 }
  0xf7   :  { %v483_v30 = vpop.permute.xlu1 %482  ;;  %v463_v39 = vpop.permute.xlu0 %462 }
  0xf8   :  { %v877_v6 = vpop.eup %876  ;;  %v438_v54 = vpop.permute.xlu2 %437 }
  0xf9   :  { %498 = vmatpush.msra.mxu0 %v877_v6  ;;  %817 = vmatpush.msra.mxu3 %v877_v6  ;;  %v879_v42 = vpop.eup %878 }
  0xfa   :  { %v881_v8 = vpop.eup %880 }
  0xfb   :  { %499 = vmatpush.msra.mxu0 %v879_v42  ;;  %818 = vmatpush.msra.mxu3 %v879_v42 }
  0xfd   :  { %500 = vmatpush.msra.mxu0 %v881_v8  ;;  %819 = vmatpush.msra.mxu3 %v881_v8 }
  0xfe   :  { %501 = vmatmul.f32.vlgmr.msra.gmra.mxu0 %v373_v44  ;;  %528 = vmatmul.f32.vlgmr.msra.gmra.mxu3 %v382_v7 }
  0xff   :  { %v473_v35 = vpop.permute.xlu1 %472  ;;  %v448_v50 = vpop.permute.xlu0 %447 }
 0x100   :  { %v423_v4 = vpop.permute.xlu2 %422 }
 0x106   :  { %504 = vmatmul.f32.gmra.mxu0 %v374_v9  ;;  %531 = vmatmul.f32.gmra.mxu3 %v383_v10 }
 0x107   :  { %v458_v41 = vpop.permute.xlu1 %457  ;;  %v433_v62 = vpop.permute.xlu0 %432 }
 0x10e   :  { %507 = vmatmul.f32.gmra.mxu0 %v375_v11  ;;  %534 = vmatmul.f32.gmra.mxu3 %v384_v12 }
 0x10f   :  { %v443_v52 = vpop.permute.xlu1 %442  ;;  %v418_v9 = vpop.permute.xlu0 %417 }
 0x116   :  { %510 = vmatmul.f32.gmra.mxu0 %v376_v13  ;;  %537 = vmatmul.f32.gmra.mxu3 %v385_v14 }
 0x117   :  { %v428_v1 = vpop.permute.xlu1 %427 }
 0x11e   :  { %513 = vmatmul.f32.gmra.mxu0 %v377_v15  ;;  %540 = vmatmul.f32.gmra.mxu3 %v386_v16  ;;  %v408_v15 = vpop.permute.xlu2 %407 }
 0x11f   :  { %v413_v12 = vpop.permute.xlu1 %412 }
 0x126   :  { %516 = vmatmul.f32.gmra.mxu0 %v378_v17  ;;  %543 = vmatmul.f32.gmra.mxu3 %v387_v18 }
 0x12e   :  { %519 = vmatmul.f32.gmra.mxu0 %v379_v19  ;;  %546 = vmatmul.f32.gmra.mxu3 %v388_v20 }
 0x136   :  { %522 = vmatmul.f32.gmra.mxu0 %v380_v21 }
 0x13e   :  { %525 = vmatmul.f32.gmra.mxu0 %v381_v22  ;;  %v566_v22 = vld [vmem:[%s1428_s5] sm:$0xff] }
 0x17b   :  { %v1348_v23 = vpop.f32.mrf.mxu0 }
 0x17c   :  { %v503_v17 = vadd.f32 %v1348_v23, %v408_v15  ;;  %v575_v23 = vld [vmem:[%s1428_s5 + $0x48] sm:$0xff] }
 0x181   :  { %v529_v24 = vpop.f32.mrf.mxu3 }
 0x182   :  { %v530_v55 = vadd.f32 %v529_v24, %v453_v45 }
 0x183   :  { %v1350_v25 = vpop.f32.mrf.mxu0 }
 0x184   :  { %v506_v14 = vadd.f32 %v1350_v25, %v413_v12  ;;  %v567_v25 = vld [vmem:[%s1428_s5 + $0x8] sm:$0xff] }
 0x189   :  { %v532_v26 = vpop.f32.mrf.mxu3 }
 0x18a   :  { %v533_v57 = vadd.f32 %v532_v26, %v458_v41  ;;  %v576_v26 = vld [vmem:[%s1428_s5 + $0x50] sm:$0xff] }
 0x18b   :  { %v1352_v27 = vpop.f32.mrf.mxu0 }
 0x18c   :  { %v509_v11 = vadd.f32 %v1352_v27, %v418_v9  ;;  %v568_v27 = vld [vmem:[%s1428_s5 + $0x10] sm:$0xff] }
 0x191   :  { %v535_v28 = vpop.f32.mrf.mxu3 }
 0x192   :  { %v536_v53 = vadd.f32 %v535_v28, %v463_v39  ;;  %v577_v28 = vld [vmem:[%s1428_s5 + $0x58] sm:$0xff] }
 0x193   :  { %v1354_v29 = vpop.f32.mrf.mxu0 }
 0x194   :  { %v512_v8 = vadd.f32 %v1354_v29, %v423_v4  ;;  %v569_v29 = vld [vmem:[%s1428_s5 + $0x18] sm:$0xff] }
 0x199   :  { %v538_v31 = vpop.f32.mrf.mxu3 }
 0x19a   :  { %v539_v51 = vadd.f32 %v538_v31, %v468_v37  ;;  %v570_v31 = vld [vmem:[%s1428_s5 + $0x20] sm:$0xff]  ;;  %v573_v37 = vld [vmem:[%s1428_s5 + $0x38] sm:$0xff] }
 0x19b   :  { %v514_v33 = vpop.f32.mrf.mxu0 }
 0x19c   :  { %v515_v44 = vadd.f32 %v514_v33, %v428_v1  ;;  %v571_v33 = vld [vmem:[%s1428_s5 + $0x28] sm:$0xff] }
 0x1a1   :  { %v541_v34 = vpop.f32.mrf.mxu3 }
 0x1a2   :  { %v542_v43 = vadd.f32 %v541_v34, %v473_v35  ;;  %v580_v34 = vld [vmem:[%s1428_s5 + $0x70] sm:$0xff] }
 0x1a3   :  { %v517_v36 = vpop.f32.mrf.mxu0  ;;  %v572_v35 = vld [vmem:[%s1428_s5 + $0x30] sm:$0xff] }
 0x1a4   :  { %v518_v6 = vadd.f32 %v517_v36, %v433_v62  ;;  %v581_v36 = vld [vmem:[%s1428_s5 + $0x78] sm:$0xff] }
 0x1a9   :  { %v544_v38 = vpop.f32.mrf.mxu3 }
 0x1aa   :  { %v545_v47 = vadd.f32 %v544_v38, %v478_v32  ;;  %v579_v32 = vld [vmem:[%s1428_s5 + $0x68] sm:$0xff]  ;;  %v574_v38 = vld [vmem:[%s1428_s5 + $0x40] sm:$0xff] }
 0x1ab   :  { %v520_v40 = vpop.f32.mrf.mxu0 }
 0x1ac   :  { %v521_v3 = vadd.f32 %v520_v40, %v438_v54 }
 0x1b1   :  { %v547_v46 = vpop.f32.mrf.mxu3 }
 0x1b2   :  { %v548_v48 = vadd.f32 %v547_v46, %v483_v30  ;;  %v578_v30 = vld [vmem:[%s1428_s5 + $0x60] sm:$0xff] }
 0x1b3   :  { %v523_v49 = vpop.f32.mrf.mxu0 }
 0x1b4   :  { %882 = vtanh.f32 %v548_v48  ;;  %v524_v0 = vadd.f32 %v523_v49, %v443_v52 }
 0x1b5   :  { %884 = vtanh.f32 %v545_v47 }
 0x1b6   :  { %886 = vtanh.f32 %v542_v43  ;;  %v676_v43 = vpop.permute.xlu0 %675 }
 0x1b7   :  { %888 = vtanh.f32 %v539_v51  ;;  %v671_v51 = vpop.permute.xlu1 %670 }
 0x1b8   :  { %890 = vtanh.f32 %v536_v53  ;;  %v666_v53 = vpop.permute.xlu2 %665 }
 0x1b9   :  { %892 = vtanh.f32 %v533_v57 }
 0x1ba   :  { %v883_v56 = vpop.eup %882  ;;  %894 = vtanh.f32 %v530_v55 }
 0x1bb   :  { %v526_v58 = vpop.f32.mrf.mxu0  ;;  %678 = vmatpush.msra.mxu1 %v883_v56  ;;  %820 = vmatpush.msra.mxu2 %v883_v56  ;;  %v885_v59 = vpop.eup %884 }
 0x1bc   :  { %v887_v60 = vpop.eup %886  ;;  %v527_v61 = vadd.f32 %v526_v58, %v448_v50 }
 0x1bd   :  { %679 = vmatpush.msra.mxu1 %v885_v59  ;;  %821 = vmatpush.msra.mxu2 %v885_v59  ;;  %v889_v63 = vpop.eup %888 }
 0x1be   :  { %v891_v2 = vpop.eup %890  ;;  %896 = vtanh.f32 %v527_v61  ;;  %v661_v56 = vpop.permute.xlu0 %660 }
 0x1bf   :  { %680 = vmatpush.msra.mxu1 %v887_v60  ;;  %822 = vmatpush.msra.mxu2 %v887_v60  ;;  %v893_v5 = vpop.eup %892  ;;  %898 = vtanh.f32 %v524_v0  ;;  %v656_v58 = vpop.permute.xlu1 %655 }
 0x1c0   :  { %v895_v42 = vpop.eup %894  ;;  %900 = vtanh.f32 %v521_v3  ;;  %v651_v55 = vpop.permute.xlu2 %650 }
 0x1c1   :  { %681 = vmatpush.msra.mxu1 %v889_v63  ;;  %823 = vmatpush.msra.mxu2 %v889_v63  ;;  %902 = vtanh.f32 %v518_v6 }
 0x1c2   :  { %904 = vtanh.f32 %v515_v44 }
 0x1c3   :  { %682 = vmatpush.msra.mxu1 %v891_v2  ;;  %824 = vmatpush.msra.mxu2 %v891_v2  ;;  %906 = vtanh.f32 %v512_v8 }
 0x1c4   :  { %v897_v7 = vpop.eup %896  ;;  %908 = vtanh.f32 %v509_v11 }
 0x1c5   :  { %683 = vmatpush.msra.mxu1 %v893_v5  ;;  %825 = vmatpush.msra.mxu2 %v893_v5  ;;  %v899_v10 = vpop.eup %898  ;;  %910 = vtanh.f32 %v506_v14 }
 0x1c6   :  { %v901_v13 = vpop.eup %900  ;;  %912 = vtanh.f32 %v503_v17  ;;  %v646_v60 = vpop.permute.xlu0 %645 }
 0x1c7   :  { %684 = vmatpush.msra.mxu1 %v895_v42  ;;  %826 = vmatpush.msra.mxu2 %v895_v42  ;;  %v903_v16 = vpop.eup %902  ;;  %v641_v2 = vpop.permute.xlu1 %640 }
 0x1c8   :  { %v905_v18 = vpop.eup %904  ;;  %v636_v4 = vpop.permute.xlu2 %635 }
 0x1c9   :  { %685 = vmatpush.msra.mxu1 %v897_v7  ;;  %827 = vmatpush.msra.mxu2 %v897_v7  ;;  %v907_v19 = vpop.eup %906 }
 0x1ca   :  { %v909_v20 = vpop.eup %908 }
 0x1cb   :  { %686 = vmatpush.msra.mxu1 %v899_v10  ;;  %828 = vmatpush.msra.mxu2 %v899_v10  ;;  %v911_v21 = vpop.eup %910 }
 0x1cc   :  { %v913_v24 = vpop.eup %912 }
 0x1cd   :  { %687 = vmatpush.msra.mxu1 %v901_v13  ;;  %829 = vmatpush.msra.mxu2 %v901_v13 }
 0x1ce   :  { %v631_v6 = vpop.permute.xlu0 %630 }
 0x1cf   :  { %688 = vmatpush.msra.mxu1 %v903_v16  ;;  %830 = vmatpush.msra.mxu2 %v903_v16  ;;  %v626_v12 = vpop.permute.xlu1 %625 }
 0x1d0   :  { %v621_v15 = vpop.permute.xlu2 %620 }
 0x1d1   :  { %689 = vmatpush.msra.mxu1 %v905_v18  ;;  %831 = vmatpush.msra.mxu2 %v905_v18 }
 0x1d3   :  { %690 = vmatpush.msra.mxu1 %v907_v19  ;;  %832 = vmatpush.msra.mxu2 %v907_v19 }
 0x1d5   :  { %691 = vmatpush.msra.mxu1 %v909_v20  ;;  %833 = vmatpush.msra.mxu2 %v909_v20 }
 0x1d6   :  { %v616_v18 = vpop.permute.xlu0 %615 }
 0x1d7   :  { %692 = vmatpush.msra.mxu1 %v911_v21  ;;  %834 = vmatpush.msra.mxu2 %v911_v21 }
 0x1d9   :  { %693 = vmatpush.msra.mxu1 %v913_v24  ;;  %835 = vmatpush.msra.mxu2 %v913_v24 }
 0x1da   :  { %694 = vmatmul.f32.vlgmr.msra.gmra.mxu1 %v566_v22  ;;  %721 = vmatmul.f32.vlgmr.msra.gmra.mxu2 %v575_v23 }
 0x1e2   :  { %697 = vmatmul.f32.gmra.mxu1 %v567_v25  ;;  %724 = vmatmul.f32.gmra.mxu2 %v576_v26  ;;  %v611_v25 = vpop.permute.xlu1 %610 }
 0x1ea   :  { %700 = vmatmul.f32.gmra.mxu1 %v568_v27  ;;  %727 = vmatmul.f32.gmra.mxu2 %v577_v28  ;;  %v606_v28 = vpop.permute.xlu2 %605 }
 0x1f2   :  { %703 = vmatmul.f32.gmra.mxu1 %v569_v29  ;;  %730 = vmatmul.f32.gmra.mxu2 %v578_v30 }
 0x1fa   :  { %706 = vmatmul.f32.gmra.mxu1 %v570_v31  ;;  %733 = vmatmul.f32.gmra.mxu2 %v579_v32  ;;  %v601_v31 = vpop.permute.xlu0 %600 }
 0x202   :  { %709 = vmatmul.f32.gmra.mxu1 %v571_v33  ;;  %736 = vmatmul.f32.gmra.mxu2 %v580_v34 }
 0x20a   :  { %712 = vmatmul.f32.gmra.mxu1 %v572_v35  ;;  %739 = vmatmul.f32.gmra.mxu2 %v581_v36 }
 0x212   :  { %715 = vmatmul.f32.gmra.mxu1 %v573_v37 }
 0x21a   :  { %718 = vmatmul.f32.gmra.mxu1 %v574_v38  ;;  %v759_v38 = vld [vmem:[%s1430_s7] sm:$0xff] }
 0x257   :  { %v1408_v39 = vpop.f32.mrf.mxu1 }
 0x258   :  { %v696_v33 = vadd.f32 %v1408_v39, %v601_v31  ;;  %v764_v39 = vpop.permute.xlu1 %763 }
 0x25d   :  { %v722_v40 = vpop.f32.mrf.mxu2 }
 0x25e   :  { %v723_v9 = vadd.f32 %v722_v40, %v646_v60 }
 0x25f   :  { %v1410_v41 = vpop.f32.mrf.mxu1 }
 0x260   :  { %v699_v30 = vadd.f32 %v1410_v41, %v606_v28 }
 0x265   :  { %v725_v45 = vpop.f32.mrf.mxu2 }
 0x266   :  { %v726_v44 = vadd.f32 %v725_v45, %v651_v55 }
 0x267   :  { %v1412_v46 = vpop.f32.mrf.mxu1 }
 0x268   :  { %v702_v27 = vadd.f32 %v1412_v46, %v611_v25 }
 0x26d   :  { %v728_v47 = vpop.f32.mrf.mxu2 }
 0x26e   :  { %v729_v5 = vadd.f32 %v728_v47, %v656_v58 }
 0x26f   :  { %v704_v48 = vpop.f32.mrf.mxu1 }
 0x270   :  { %v705_v24 = vadd.f32 %v704_v48, %v616_v18 }
 0x275   :  { %v731_v49 = vpop.f32.mrf.mxu2 }
 0x276   :  { %v732_v3 = vadd.f32 %v731_v49, %v661_v56 }
 0x277   :  { %v707_v50 = vpop.f32.mrf.mxu1 }
 0x278   :  { %v708_v22 = vadd.f32 %v707_v50, %v621_v15 }
 0x27d   :  { %v734_v52 = vpop.f32.mrf.mxu2 }
 0x27e   :  { %v735_v1 = vadd.f32 %v734_v52, %v666_v53 }
 0x27f   :  { %v710_v54 = vpop.f32.mrf.mxu1 }
 0x280   :  { %v711_v20 = vadd.f32 %v710_v54, %v626_v12 }
 0x285   :  { %v737_v57 = vpop.f32.mrf.mxu2 }
 0x286   :  { %v738_v62 = vadd.f32 %v737_v57, %v671_v51 }
 0x287   :  { %v713_v59 = vpop.f32.mrf.mxu1 }
 0x288   :  { %v714_v17 = vadd.f32 %v713_v59, %v631_v6 }
 0x28d   :  { %v740_v61 = vpop.f32.mrf.mxu2 }
 0x28e   :  { %v741_v63 = vadd.f32 %v740_v61, %v676_v43 }
 0x28f   :  { %v716_v0 = vpop.f32.mrf.mxu1 }
 0x290   :  { %914 = vtanh.f32 %v741_v63  ;;  %v717_v14 = vadd.f32 %v716_v0, %v636_v4 }
 0x291   :  { %916 = vtanh.f32 %v738_v62 }
 0x292   :  { %918 = vtanh.f32 %v735_v1 }
 0x293   :  { %920 = vtanh.f32 %v732_v3 }
 0x294   :  { %922 = vtanh.f32 %v729_v5 }
 0x295   :  { %924 = vtanh.f32 %v726_v44 }
 0x296   :  { %v915_v42 = vpop.eup %914  ;;  %926 = vtanh.f32 %v723_v9 }
 0x297   :  { %v719_v7 = vpop.f32.mrf.mxu1  ;;  %766 = vmatpush.msrb.mxu2 %v915_v42  ;;  %v917_v8 = vpop.eup %916 }
 0x298   :  { %v919_v10 = vpop.eup %918  ;;  %v720_v11 = vadd.f32 %v719_v7, %v641_v2 }
 0x299   :  { %767 = vmatpush.msrb.mxu2 %v917_v8  ;;  %v921_v13 = vpop.eup %920 }
 0x29a   :  { %v923_v16 = vpop.eup %922  ;;  %928 = vtanh.f32 %v720_v11 }
 0x29b   :  { %768 = vmatpush.msrb.mxu2 %v919_v10  ;;  %v925_v19 = vpop.eup %924  ;;  %930 = vtanh.f32 %v717_v14 }
 0x29c   :  { %v927_v21 = vpop.eup %926  ;;  %932 = vtanh.f32 %v714_v17 }
 0x29d   :  { %769 = vmatpush.msrb.mxu2 %v921_v13  ;;  %934 = vtanh.f32 %v711_v20 }
 0x29e   :  { %936 = vtanh.f32 %v708_v22 }
 0x29f   :  { %770 = vmatpush.msrb.mxu2 %v923_v16  ;;  %938 = vtanh.f32 %v705_v24 }
 0x2a0   :  { %v929_v23 = vpop.eup %928  ;;  %940 = vtanh.f32 %v702_v27 }
 0x2a1   :  { %771 = vmatpush.msrb.mxu2 %v925_v19  ;;  %v931_v26 = vpop.eup %930  ;;  %942 = vtanh.f32 %v699_v30 }
 0x2a2   :  { %v933_v29 = vpop.eup %932  ;;  %944 = vtanh.f32 %v696_v33 }
 0x2a3   :  { %772 = vmatpush.msrb.mxu2 %v927_v21  ;;  %v935_v32 = vpop.eup %934 }
 0x2a4   :  { %v937_v34 = vpop.eup %936 }
 0x2a5   :  { %773 = vmatpush.msrb.mxu2 %v929_v23  ;;  %v939_v35 = vpop.eup %938 }
 0x2a6   :  { %v941_v36 = vpop.eup %940 }
 0x2a7   :  { %774 = vmatpush.msrb.mxu2 %v931_v26  ;;  %v943_v37 = vpop.eup %942 }
 0x2a8   :  { %v945_v40 = vpop.eup %944 }
 0x2a9   :  { %775 = vmatpush.msrb.mxu2 %v933_v29 }
 0x2ab   :  { %776 = vmatpush.msrb.mxu2 %v935_v32 }
 0x2ad   :  { %777 = vmatpush.msrb.mxu2 %v937_v34 }
 0x2af   :  { %778 = vmatpush.msrb.mxu2 %v939_v35 }
 0x2b1   :  { %779 = vmatpush.msrb.mxu2 %v941_v36 }
 0x2b3   :  { %780 = vmatpush.msrb.mxu2 %v943_v37 }
 0x2b5   :  { %781 = vmatpush.msrb.mxu2 %v945_v40 }
 0x2b6   :  { %782 = vmatmul.f32.vlgmr.msrb.gmra.mxu2 %v759_v38 }
 0x339   :  { %v783_v41 = vpop.f32.mrf.mxu2 }
 0x33a   :  { %v784_v45 = vadd.f32 %v783_v41, %v764_v39 }
 0x33c   :  { %946 = vtanh.f32 %v784_v45 }
 0x342   :  { %v947_v46 = vpop.eup %946 }
 0x343   :  { %787 = vst [vmem:[#allocation2] sm:$0x3] %v947_v46 }
 0x344   :  { %798 = dma.vmem_to_hbm [thread:$0]  %s794_s2, 32, %s796_s15, [#allocation3]  }
 0x345   :  { %972 = dma.done.wait [#allocation3], 32  }
 0x346   :  { %973 = vsyncadd [#allocation3], 4294967264 }
 0x347   :  { %803 = vsyncpa [#allocation3], 1 }

</bundles_post_ra>
